<compile_context>
chip_gen: v5e
topology: v5e:2x2
jax: 0.10.0
libtpu: 0.0.40
codegen_flags: <defaults>
</compile_context>

<pallas_src>
import math
from functools import partial

import jax
import jax.numpy as jnp
from jax import lax
from jax.experimental import pallas as pl
from jax.experimental.pallas import tpu as pltpu


# --------------------------------------------------------------------------
# host-side packing helpers (run once per parameter set, NOT per call)
# --------------------------------------------------------------------------
def _round_up(x, m):
    return (x + m - 1) // m * m


def _block_diag(w, reps):
    # block-diagonal via kron(I, w) — no Python .at[].set() loop
    return jnp.kron(jnp.eye(reps, dtype=w.dtype), w)


def _pack_rows(blocks, lane_width):
    """Stack 2-D blocks along sublanes; every block starts on an 8-row
    boundary and is zero-padded to `lane_width` lanes.
    Returns (packed array, static per-block row offsets)."""
    parts, offsets, cur = [], [], 0
    for blk in blocks:
        r, c = blk.shape
        offsets.append(cur)
        part = jnp.zeros((_round_up(r, 8), lane_width), blk.dtype)
        part = part.at[:r, :c].set(blk)
        parts.append(part)
        cur += part.shape[0]
    return jnp.concatenate(parts, axis=0), tuple(offsets)


# --------------------------------------------------------------------------
# one-time prepare: fold linears, hoist batch-invariant branch, pack operands
# --------------------------------------------------------------------------
def yang_gcn_prepare(params, adj, wd_clues, batch_sz, group_sz=None):
    """Re-run only when params / adj / wd_clues change (they are module
    parameters / buffers in the PyTorch model)."""
    input_sz = params["w_in"].shape[0]
    hid = params["w1a"].shape[1]
    out_sz = params["bm"].shape[-1]
    N = adj.shape[0]

    if group_sz is None:
        group_sz = batch_sz
    assert batch_sz % group_sz == 0, "batch must split into equal lane groups"
    G = group_sz
    n_groups = batch_sz // G
    GL, GI = G * hid, G * input_sz

    f32 = jnp.float32
    adj = adj.astype(f32)

    # folded batch-dependent linear:  v = x @ wfold + bfold
    wfold = (params["w_in"] @ params["w1a"]).astype(f32)              # (in, hid)
    bfold = (params["b_in"] @ params["w1a"]).astype(f32)              # (1, hid)

    # hoisted batch-invariant branch (word path + gc1's adj matmul + biases)
    we = wd_clues @ params["w_wd"] + params["b_wd"]                   # (N, m)
    g1b = adj @ (we @ params["w1b"]) + params["b1"]                   # (N, hid)
    row_sum = adj.sum(axis=1, keepdims=True)                          # (N, 1)
    # adj @ broadcast(v + bfold) == row_sum*v + (row_sum*bfold + g1b)
    g1_eff = jnp.tile(g1b + row_sum * bfold, (1, G))                  # (N, GL)
    rs_wide = jnp.broadcast_to(row_sum, (N, GL)).astype(f32)          # (N, GL)

    # block-diagonal per-group weights (batch packed along the lane axis)
    wfold_g = _block_diag(wfold, G)                                   # (GI, GL)
    w2_g = _block_diag(params["w2"].astype(f32), G)                   # (GL, GL)
    b2_g = jnp.tile(params["b2"].astype(f32), (1, G))                 # (1, GL)
    w3_g = _block_diag(params["w3"].T.astype(f32), G)                 # (GL, G)

    # two packed static buffers -> 4 input DMAs per call instead of 16
    packw, offw = _pack_rows([wfold_g, w2_g, g1_eff, rs_wide, b2_g], GL)
    Ln = max(out_sz, G)
    packn, offn = _pack_rows(
        [w3_g, params["wm"].astype(f32), params["bm"].astype(f32),
         params["b3"].astype(f32)], Ln)

    dims = dict(B=batch_sz, G=G, n_groups=n_groups, N=N, hid=hid,
                input_sz=input_sz, out_sz=out_sz, GL=GL, GI=GI, Ln=Ln,
                offw=offw, offn=offn)
    return (packw, adj, packn), dims


# --------------------------------------------------------------------------
# kernel: one grid step = one lane-packed batch group
# --------------------------------------------------------------------------
def _yang_gcn_kernel(x_ref, packw_ref, adj_ref, packn_ref, out_ref, *, dims):
    f32 = jnp.float32
    N, G = dims["N"], dims["G"]
    GL, GI, out_sz = dims["GL"], dims["GI"], dims["out_sz"]
    o_wf, o_w2, o_g1, o_rs, o_b2 = dims["offw"]
    o_w3, o_wm, o_bm, o_b3 = dims["offn"]

    adj = adj_ref[...]                                       # (N, N)
    x_pack = x_ref[0]                                        # (1, GI)

    # static, 8-row-aligned slices of the two packed buffers
    wfold_g = packw_ref[o_wf:o_wf + GI, :]                   # (GI, GL)
    w2_g    = packw_ref[o_w2:o_w2 + GL, :]                   # (GL, GL)
    g1_eff  = packw_ref[o_g1:o_g1 + N, :]                    # (N, GL)
    rs_wide = packw_ref[o_rs:o_rs + N, :]                    # (N, GL)
    b2_g    = packw_ref[o_b2:o_b2 + 1, :]                    # (1, GL)
    w3_g = packn_ref[o_w3:o_w3 + GL, 0:G]                    # (GL, G)
    wm   = packn_ref[o_wm:o_wm + N, 0:out_sz]                # (N, out_sz)
    bm   = packn_ref[o_bm:o_bm + 1, 0:out_sz]                # (1, out_sz)
    b3   = packn_ref[o_b3:o_b3 + 1, 0:1]                     # (1, 1)

    # gc1: adj @ broadcast(v) is rank-1 -> rowsum(adj) * v (no (N,N) matmul);
    #      g1_eff already holds adj@(we@W1b) + b1 + rowsum*(b_in@W1a)
    v0 = jnp.dot(x_pack, wfold_g, preferred_element_type=f32)         # (1, GL)
    h1 = jnp.maximum(rs_wide * v0 + g1_eff, 0.0)                      # (N, GL)

    # gc2 (all batch elements of the group at once via block-diagonal W2)
    s2 = jnp.dot(h1, w2_g, preferred_element_type=f32)                # (N, GL)
    h2 = jnp.maximum(
        jnp.dot(adj, s2, preferred_element_type=f32) + b2_g, 0.0)     # (N, GL)

    # gc3: adj @ (h2 @ w3^T) == (adj @ h2) @ w3^T
    g3 = jnp.dot(adj, h2, preferred_element_type=f32)                 # (N, GL)
    h3 = jnp.maximum(
        jnp.dot(g3, w3_g, preferred_element_type=f32) + b3, 0.0)      # (N, G)

    # mapping: out[b] = h3[:, b] @ wm + bm   (contract over N)
    out = lax.dot_general(h3, wm, dimension_numbers=(((0,), (0,)), ((), ())),
                          preferred_element_type=f32) + bm            # (G, out)
    out_ref[0] = out


# --------------------------------------------------------------------------
# per-call wrapper (only layout work + the pallas_call itself)
# --------------------------------------------------------------------------
def yang_gcn_forward(x, static_ops, dims):
    packw, adj, packn = static_ops
    B, G, n_groups = dims["B"], dims["G"], dims["n_groups"]
    N, GI, GL, Ln, out_sz = (dims["N"], dims["GI"], dims["GL"],
                             dims["Ln"], dims["out_sz"])
    rw, rn = packw.shape[0], packn.shape[0]

    # per-call work is layout only: pack the batch into lane groups
    x_pack = x.astype(jnp.float32).reshape(n_groups, 1, GI)

    out = pl.pallas_call(
        partial(_yang_gcn_kernel, dims=dims),
        grid=(n_groups,),
        in_specs=[
            pl.BlockSpec((1, 1, GI), lambda g: (g, 0, 0)),   # per-group batch
            pl.BlockSpec((rw, GL), lambda g: (0, 0)),        # static pack (wide)
            pl.BlockSpec((N, N), lambda g: (0, 0)),          # adj (fetched once)
            pl.BlockSpec((rn, Ln), lambda g: (0, 0)),        # static pack (narrow)
        ],
        out_specs=pl.BlockSpec((1, G, out_sz), lambda g: (g, 0, 0)),
        out_shape=jax.ShapeDtypeStruct((n_groups, G, out_sz), jnp.float32),
        compiler_params=pltpu.CompilerParams(
            # independent lane groups -> v7x can split them across its 2 TCs
            dimension_semantics=("parallel",)),
    )(x_pack, packw, adj, packn)
    return out.reshape(B, out_sz)


# ----------------------- pure-JAX reference (matches PyTorch forward) -------
def yang_gcn_ref(x, params, adj, wd_clues):
    ie = x @ params["w_in"] + params["b_in"]            # (B, m)
    we = wd_clues @ params["w_wd"] + params["b_wd"]     # (N, m)
    B, N, m = x.shape[0], adj.shape[0], ie.shape[1]
    xc = jnp.concatenate(
        [jnp.broadcast_to(ie[:, None, :], (B, N, m)),
         jnp.broadcast_to(we[None, :, :], (B, N, m))], axis=2)
    w1 = jnp.concatenate([params["w1a"], params["w1b"]], axis=0)

    def gconv(h, w, b):
        return jnp.einsum("nm,bmh->bnh", adj, h @ w) + b

    h1 = jax.nn.relu(gconv(xc, w1, params["b1"]))
    h2 = jax.nn.relu(gconv(h1, params["w2"], params["b2"]))
    h3 = jax.nn.relu(gconv(h2, params["w3"].T, params["b3"]))   # w3 stored (1, hid)
    x4 = h3[..., 0]                                             # (B, N)
    return x4 @ params["wm"] + params["bm"]                     # wm = mapping.weight.T


# ----------------------- deterministic parameter / buffer setup -------------
def make_params(key, input_sz, wd_sz, map2sz, hid, N, out_sz):
    ks = jax.random.split(key, 13)

    def u(k, shape, fan):
        stdv = 1.0 / math.sqrt(fan)
        return jax.random.uniform(k, shape, jnp.float32, -stdv, stdv)

    return dict(
        w_in=u(ks[0], (input_sz, map2sz), map2sz), b_in=u(ks[1], (1, map2sz), map2sz),
        w_wd=u(ks[2], (wd_sz, map2sz), map2sz),    b_wd=u(ks[3], (1, map2sz), map2sz),
        w1a=u(ks[4], (map2sz, hid), hid),          w1b=u(ks[5], (map2sz, hid), hid),
        b1=u(ks[6], (1, hid), hid),
        w2=u(ks[7], (hid, hid), hid),              b2=u(ks[8], (1, hid), hid),
        w3=u(ks[9], (1, hid), 1),                  b3=u(ks[10], (1, 1), 1),
        wm=u(ks[11], (N, out_sz), out_sz),         bm=u(ks[12], (1, out_sz), out_sz),
    )


def make_adj(key, N):
    # synthetic adjacency standing in for torch.load(adjmat.dat)
    a = (jax.random.uniform(key, (N, N)) > 0.6).astype(jnp.float32)
    a = a.at[jnp.arange(N), jnp.arange(N)].set(1.0)     # fill_diagonal_(1.0)
    a = jnp.maximum(a, a.T)                             # stack([a, a.T]).max(0)
    d_inv = 1.0 / a.sum(axis=1)
    return d_inv[:, None] * a                           # diag(D) @ adj


if __name__ == "__main__":
    key = jax.random.PRNGKey(0)
    k_adj, k_wd, k_x, k_p = jax.random.split(key, 4)

    # small shapes consistent with the module's forward (B*hid = 128 lanes)
    B, input_sz, wd_sz, map2sz, hid, N, out_sz = 2, 64, 32, 32, 64, 16, 32

    adj = make_adj(k_adj, N)
    wd_clues = jax.random.normal(k_wd, (N, wd_sz), jnp.float32)   # synthetic word clues
    x = jax.random.normal(k_x, (B, input_sz), jnp.float32)
    params = make_params(k_p, input_sz, wd_sz, map2sz, hid, N, out_sz)

    ref = yang_gcn_ref(x, params, adj, wd_clues)

    # Primary path: whole batch packed into one 128-lane group (single grid step).
    static_ops, dims = yang_gcn_prepare(params, adj, wd_clues, B, group_sz=B)
    fwd = jax.jit(lambda xx, ops: yang_gcn_forward(xx, ops, dims))
    out = jax.block_until_ready(fwd(x, static_ops))
    assert out.shape == (B, out_sz)
    assert jnp.allclose(out, ref, atol=1e-4, rtol=1e-4)

    # v7x path: 2 batch groups on a "parallel" grid axis (one per TensorCore);
    # runs as 2 sequential steps on single-TC chips, same numerics.
    static_ops2, dims2 = yang_gcn_prepare(params, adj, wd_clues, B, group_sz=1)
    fwd2 = jax.jit(lambda xx, ops: yang_gcn_forward(xx, ops, dims2))
    out2 = jax.block_until_ready(fwd2(x, static_ops2))
    assert out2.shape == (B, out_sz)
    assert jnp.allclose(out2, ref, atol=1e-4, rtol=1e-4)

    print("KERNEL_OK")
</pallas_src>

<mosaic_0001>
module attributes {stable_mosaic.version = 11 : i64} {
  func.func @_yang_gcn_kernel(%arg0: i32, %arg1: memref<1x1x128xf32, #tpu.memory_space<vmem>>, %arg2: memref<296x128xf32, #tpu.memory_space<vmem>>, %arg3: memref<16x16xf32, #tpu.memory_space<vmem>>, %arg4: memref<160x32xf32, #tpu.memory_space<vmem>>, %arg5: memref<1x2x32xf32, #tpu.memory_space<vmem>>) attributes {dimension_semantics = [#tpu.dimension_semantics<parallel>], iteration_bounds = array<i64: 1>, scalar_prefetch = 0 : i64, scratch_operands = 0 : i64, tpu.core_type = #tpu.core_type<tc>, window_params = [{transform_indices = @transform_0, window_bounds = array<i64: 1, 1, 128>}, {pipeline_mode = #tpu.pipeline_mode<synchronous>, transform_indices = @transform_1, window_bounds = array<i64: 296, 128>}, {pipeline_mode = #tpu.pipeline_mode<synchronous>, transform_indices = @transform_2, window_bounds = array<i64: 16, 16>}, {pipeline_mode = #tpu.pipeline_mode<synchronous>, transform_indices = @transform_3, window_bounds = array<i64: 160, 32>}, {transform_indices = @transform_4, window_bounds = array<i64: 1, 2, 32>}]} {
    %c0 = arith.constant 0 : index
    %c0_0 = arith.constant 0 : index
    %0 = vector.load %arg3[%c0, %c0_0] : memref<16x16xf32, #tpu.memory_space<vmem>>, vector<16x16xf32>
    %c0_1 = arith.constant 0 : index
    %c0_2 = arith.constant 0 : index
    %c0_3 = arith.constant 0 : index
    %1 = vector.load %arg1[%c0_1, %c0_2, %c0_3] : memref<1x1x128xf32, #tpu.memory_space<vmem>>, vector<1x1x128xf32>
    %2 = vector.shape_cast %1 : vector<1x1x128xf32> to vector<1x128xf32>
    %c0_4 = arith.constant 0 : index
    %c0_5 = arith.constant 0 : index
    %3 = vector.load %arg2[%c0_4, %c0_5] : memref<296x128xf32, #tpu.memory_space<vmem>>, vector<128x128xf32>
    %c128 = arith.constant 128 : index
    %c0_6 = arith.constant 0 : index
    %4 = vector.load %arg2[%c128, %c0_6] : memref<296x128xf32, #tpu.memory_space<vmem>>, vector<128x128xf32>
    %c256 = arith.constant 256 : index
    %c0_7 = arith.constant 0 : index
    %5 = vector.load %arg2[%c256, %c0_7] : memref<296x128xf32, #tpu.memory_space<vmem>>, vector<16x128xf32>
    %c272 = arith.constant 272 : index
    %c0_8 = arith.constant 0 : index
    %6 = vector.load %arg2[%c272, %c0_8] : memref<296x128xf32, #tpu.memory_space<vmem>>, vector<16x128xf32>
    %c288 = arith.constant 288 : index
    %c0_9 = arith.constant 0 : index
    %7 = vector.load %arg2[%c288, %c0_9] : memref<296x128xf32, #tpu.memory_space<vmem>>, vector<1x128xf32>
    %c0_10 = arith.constant 0 : index
    %c0_11 = arith.constant 0 : index
    %8 = vector.load %arg4[%c0_10, %c0_11] : memref<160x32xf32, #tpu.memory_space<vmem>>, vector<128x2xf32>
    %c128_12 = arith.constant 128 : index
    %c0_13 = arith.constant 0 : index
    %9 = vector.load %arg4[%c128_12, %c0_13] : memref<160x32xf32, #tpu.memory_space<vmem>>, vector<16x32xf32>
    %c144 = arith.constant 144 : index
    %c0_14 = arith.constant 0 : index
    %10 = vector.load %arg4[%c144, %c0_14] : memref<160x32xf32, #tpu.memory_space<vmem>>, vector<1x32xf32>
    %c152 = arith.constant 152 : index
    %c0_15 = arith.constant 0 : index
    %11 = vector.load %arg4[%c152, %c0_15] : memref<160x32xf32, #tpu.memory_space<vmem>>, vector<1x1xf32>
    %cst = arith.constant dense<0.000000e+00> : vector<1x128xf32>
    %12 = tpu.matmul %2, %3, %cst {dimension_numbers = #tpu.dot_dimension_numbers<[1], [0], [0], [1], [0, 0, 1, 1], [], []>} : vector<1x128xf32>, vector<128x128xf32>, vector<1x128xf32> -> vector<1x128xf32>
    %13 = vector.broadcast %12 : vector<1x128xf32> to vector<16x128xf32>
    %14 = arith.mulf %6, %13 : vector<16x128xf32>
    %15 = arith.addf %14, %5 : vector<16x128xf32>
    %cst_16 = arith.constant 0.000000e+00 : f32
    %16 = vector.broadcast %cst_16 : f32 to vector<16x128xf32>
    %17 = arith.maximumf %15, %16 : vector<16x128xf32>
    %cst_17 = arith.constant dense<0.000000e+00> : vector<16x128xf32>
    %18 = tpu.matmul %17, %4, %cst_17 {dimension_numbers = #tpu.dot_dimension_numbers<[1], [0], [0], [1], [0, 0, 1, 1], [], []>} : vector<16x128xf32>, vector<128x128xf32>, vector<16x128xf32> -> vector<16x128xf32>
    %cst_18 = arith.constant dense<0.000000e+00> : vector<16x128xf32>
    %19 = tpu.matmul %0, %18, %cst_18 {dimension_numbers = #tpu.dot_dimension_numbers<[1], [0], [0], [1], [0, 0, 1, 1], [], []>} : vector<16x16xf32>, vector<16x128xf32>, vector<16x128xf32> -> vector<16x128xf32>
    %20 = vector.broadcast %7 : vector<1x128xf32> to vector<16x128xf32>
    %21 = arith.addf %19, %20 : vector<16x128xf32>
    %cst_19 = arith.constant 0.000000e+00 : f32
    %22 = vector.broadcast %cst_19 : f32 to vector<16x128xf32>
    %23 = arith.maximumf %21, %22 : vector<16x128xf32>
    %cst_20 = arith.constant dense<0.000000e+00> : vector<16x128xf32>
    %24 = tpu.matmul %0, %23, %cst_20 {dimension_numbers = #tpu.dot_dimension_numbers<[1], [0], [0], [1], [0, 0, 1, 1], [], []>} : vector<16x16xf32>, vector<16x128xf32>, vector<16x128xf32> -> vector<16x128xf32>
    %cst_21 = arith.constant dense<0.000000e+00> : vector<16x2xf32>
    %25 = tpu.matmul %24, %8, %cst_21 {dimension_numbers = #tpu.dot_dimension_numbers<[1], [0], [0], [1], [0, 0, 1, 1], [], []>} : vector<16x128xf32>, vector<128x2xf32>, vector<16x2xf32> -> vector<16x2xf32>
    %26 = vector.broadcast %11 : vector<1x1xf32> to vector<16x2xf32>
    %27 = arith.addf %25, %26 : vector<16x2xf32>
    %cst_22 = arith.constant 0.000000e+00 : f32
    %28 = vector.broadcast %cst_22 : f32 to vector<16x2xf32>
    %29 = arith.maximumf %27, %28 : vector<16x2xf32>
    %cst_23 = arith.constant dense<0.000000e+00> : vector<2x32xf32>
    %30 = tpu.matmul %29, %9, %cst_23 {dimension_numbers = #tpu.dot_dimension_numbers<[0], [0], [1], [1], [0, 1, 1, 1], [], []>} : vector<16x2xf32>, vector<16x32xf32>, vector<2x32xf32> -> vector<2x32xf32>
    %31 = vector.broadcast %10 : vector<1x32xf32> to vector<2x32xf32>
    %32 = arith.addf %30, %31 : vector<2x32xf32>
    %c0_24 = arith.constant 0 : index
    %c0_25 = arith.constant 0 : index
    %c0_26 = arith.constant 0 : index
    %33 = vector.load %arg5[%c0_24, %c0_25, %c0_26] : memref<1x2x32xf32, #tpu.memory_space<vmem>>, vector<1x2x32xf32>
    %34 = vector.shape_cast %33 : vector<1x2x32xf32> to vector<2x32xf32>
    %35 = vector.shape_cast %32 : vector<2x32xf32> to vector<1x2x32xf32>
    tpu.vector_store %arg5[%c0_24, %c0_25, %c0_26], %35 {strides = array<i32>} : memref<1x2x32xf32, #tpu.memory_space<vmem>>, vector<1x2x32xf32>,
    return
  }
  func.func @transform_0(%arg0: i32) -> (i32, i32, i32) {
    %c0_i32 = arith.constant 0 : i32
    %c0_i32_0 = arith.constant 0 : i32
    %c0_i32_1 = arith.constant 0 : i32
    return %arg0, %c0_i32, %c0_i32_0 : i32, i32, i32
  }
  func.func @transform_1(%arg0: i32) -> (i32, i32) {
    %c0_i32 = arith.constant 0 : i32
    %c0_i32_0 = arith.constant 0 : i32
    %c0_i32_1 = arith.constant 0 : i32
    return %c0_i32, %c0_i32_0 : i32, i32
  }
  func.func @transform_2(%arg0: i32) -> (i32, i32) {
    %c0_i32 = arith.constant 0 : i32
    %c0_i32_0 = arith.constant 0 : i32
    %c0_i32_1 = arith.constant 0 : i32
    return %c0_i32, %c0_i32_0 : i32, i32
  }
  func.func @transform_3(%arg0: i32) -> (i32, i32) {
    %c0_i32 = arith.constant 0 : i32
    %c0_i32_0 = arith.constant 0 : i32
    %c0_i32_1 = arith.constant 0 : i32
    return %c0_i32, %c0_i32_0 : i32, i32
  }
  func.func @transform_4(%arg0: i32) -> (i32, i32, i32) {
    %c0_i32 = arith.constant 0 : i32
    %c0_i32_0 = arith.constant 0 : i32
    %c0_i32_1 = arith.constant 0 : i32
    return %arg0, %c0_i32, %c0_i32_0 : i32, i32, i32
  }
}

</mosaic_0001>

<bundles_post_ra>
// kernel: _lambda_.1
= control target key start
LH: loop header
LB: loop body
LE: loop exit
PB: predicated region body
PF: predicated region fallthrough
CT: control target
= control target key end

     0   :  { %9 = vsyncpa [#allocation3], 0  ;;  %s479_s0 = inlined_call_operand.vmem [shape: f32[1,1,128], index: 0, kind: input, shape index: {}]   ;;  %s480_s1 = inlined_call_operand.hbm [shape: f32[296,128], index: 1, kind: input, shape index: {}]   ;;  %s481_s2 = inlined_call_operand.vmem [shape: f32[16,16], index: 2, kind: input, shape index: {}]   ;;  %s482_s3 = inlined_call_operand.vmem [shape: f32[160,32], index: 3, kind: input, shape index: {}]   ;;  %s483_s4 = inlined_call_operand.hbm [shape: f32[1,2,32], index: 4, kind: output, shape index: {}]  }
   0x1   :  { %10 = vsyncpa [#allocation4], 0  ;;  %s17_s17 = sshll.u32 %s480_s1, 4  ;;  %s370_s18 = smov [#allocation2]   ;;  %s18_s17 = int_to_ptr.hbm [resolvable:$true] %s17_s17 }
   0x2   :  { %s19_s19 = sshll.u32 %s370_s18, 4  ;;  %s371_s20 = smov 128   ;;  %s20_s19 = int_to_ptr.vmem [resolvable:$true] %s19_s19 }
   0x3   :  { %s372_s21 = smov 8  }
   0x4   :  { %25 = dma.hbm_to_vmem [thread:$0]  %s18_s17, 4736, %s20_s19, [#allocation3], %s371_s20, %s371_s20, %s372_s21  }
   0x5   :  { %366 = dma.done.wait [#allocation3], 4736  }
   0x6   :  { %367 = vsyncadd [#allocation3], 4294962560  ;;  %v52_v0 = vld [vmem:[#allocation2 + $0x78] sm:$0xff]  ;;  %v51_v1 = vld [vmem:[#allocation2 + $0x70] sm:$0xff]  ;;  %vm145_vm0 = vcmask 130048   ;;  %s373_s11 = smov [#allocation5]  }
   0x7   :  { %94 = vmatpush.msra.mxu0 %v52_v0  ;;  %v50_v2 = vld [vmem:[#allocation2 + $0x68] sm:$0xff]  ;;  %v49_v3 = vld [vmem:[#allocation2 + $0x60] sm:$0xff]  ;;  %v68_v4 = vld [vmem:[#allocation2 + $0xf8] sm:$0xff]  ;;  %s292_s12 = sshll.u32 %s373_s11, 4  ;;  %s294_s15 = sshll.u32 %s483_s4, 4  ;;  %vm285_vm1 = vcmask 254976   ;;  %s293_s12 = int_to_ptr.vmem [resolvable:$true] %s292_s12  ;;  %s295_s15 = int_to_ptr.hbm [resolvable:$true] %s294_s15 }
   0x8   :  { %v48_v5 = vld [vmem:[#allocation2 + $0x58] sm:$0xff]  ;;  %121 = vmatpush.msra.mxu1 %v68_v4  ;;  %v67_v6 = vld [vmem:[#allocation2 + $0xf0] sm:$0xff]  ;;  %v66_v7 = vld [vmem:[#allocation2 + $0xe8] sm:$0xff] }
   0x9   :  { %95 = vmatpush.msra.mxu0 %v51_v1  ;;  %v47_v8 = vld [vmem:[#allocation2 + $0x50] sm:$0xff]  ;;  %v65_v9 = vld [vmem:[#allocation2 + $0xe0] sm:$0xff]  ;;  %v46_v10 = vld [vmem:[#allocation2 + $0x48] sm:$0xff] }
   0xa   :  { %122 = vmatpush.msra.mxu1 %v67_v6  ;;  %v64_v11 = vld [vmem:[#allocation2 + $0xd8] sm:$0xff]  ;;  %v45_v12 = vld [vmem:[#allocation2 + $0x40] sm:$0xff]  ;;  %v63_v13 = vld [vmem:[#allocation2 + $0xd0] sm:$0xff] }
   0xb   :  { %96 = vmatpush.msra.mxu0 %v50_v2  ;;  %v44_v14 = vld [vmem:[#allocation2 + $0x38] sm:$0xff]  ;;  %v62_v15 = vld [vmem:[#allocation2 + $0xc8] sm:$0xff]  ;;  %v43_v16 = vld [vmem:[#allocation2 + $0x30] sm:$0xff] }
   0xc   :  { %123 = vmatpush.msra.mxu1 %v66_v7  ;;  %v61_v17 = vld [vmem:[#allocation2 + $0xc0] sm:$0xff]  ;;  %v42_v18 = vld [vmem:[#allocation2 + $0x28] sm:$0xff]  ;;  %v60_v19 = vld [vmem:[#allocation2 + $0xb8] sm:$0xff] }
   0xd   :  { %97 = vmatpush.msra.mxu0 %v49_v3  ;;  %v41_v20 = vld [vmem:[#allocation2 + $0x20] sm:$0xff]  ;;  %v59_v21 = vld [vmem:[#allocation2 + $0xb0] sm:$0xff]  ;;  %v40_v22 = vld [vmem:[#allocation2 + $0x18] sm:$0xff] }
   0xe   :  { %124 = vmatpush.msra.mxu1 %v65_v9  ;;  %v58_v23 = vld [vmem:[#allocation2 + $0xa8] sm:$0xff]  ;;  %v39_v24 = vld [vmem:[#allocation2 + $0x10] sm:$0xff]  ;;  %v37_v26 = vld [vmem:[#allocation2] sm:$0xff] }
   0xf   :  { %98 = vmatpush.msra.mxu0 %v48_v5  ;;  %v38_v25 = vld [vmem:[#allocation2 + $0x8] sm:$0xff]  ;;  %v36_v27 = vld [vmem:[%s479_s0] sm:$0x1]  ;;  %v56_v29 = vld [vmem:[#allocation2 + $0x98] sm:$0xff] }
  0x10   :  { %125 = vmatpush.msra.mxu1 %v64_v11  ;;  %v57_v28 = vld [vmem:[#allocation2 + $0xa0] sm:$0xff]  ;;  %v55_v30 = vld [vmem:[#allocation2 + $0x90] sm:$0xff]  ;;  %v54_v31 = vld [vmem:[#allocation2 + $0x88] sm:$0xff] }
  0x11   :  { %99 = vmatpush.msra.mxu0 %v47_v8  ;;  %v53_v32 = vld [vmem:[#allocation2 + $0x80] sm:$0xff]  ;;  %v71_v33 = vld [vmem:[#allocation2 + $0x110] sm:$0xff]  ;;  %v72_v38 = vld [vmem:[#allocation2 + $0x118] sm:$0xff] }
  0x12   :  { %126 = vmatpush.msra.mxu1 %v63_v13  ;;  %v69_v36 = vld [vmem:[#allocation2 + $0x100] sm:$0xff]  ;;  %v70_v42 = vld [vmem:[#allocation2 + $0x108] sm:$0xff]  ;;  %v89_v49 = vld [vmem:[%s482_s3 + $0x78] sm:$0xff] }
  0x13   :  { %100 = vmatpush.msra.mxu0 %v46_v10  ;;  %v34_v47 = vld [vmem:[%s481_s2] sm:$0xff]  ;;  %v35_v48 = vld [vmem:[%s481_s2 + $0x8] sm:$0xff]  ;;  %v88_v50 = vld [vmem:[%s482_s3 + $0x70] sm:$0xff]  ;;  %204 = vmatpush.msra.mxu2 %v89_v49 }
  0x14   :  { %127 = vmatpush.msra.mxu1 %v62_v15  ;;  %v87_v51 = vld [vmem:[%s482_s3 + $0x68] sm:$0xff]  ;;  %v86_v52 = vld [vmem:[%s482_s3 + $0x60] sm:$0xff]  ;;  %v85_v53 = vld [vmem:[%s482_s3 + $0x58] sm:$0xff] }
  0x15   :  { %101 = vmatpush.msra.mxu0 %v45_v12  ;;  %205 = vmatpush.msra.mxu2 %v88_v50  ;;  %v84_v55 = vld [vmem:[%s482_s3 + $0x50] sm:$0xff]  ;;  %v83_v56 = vld [vmem:[%s482_s3 + $0x48] sm:$0xff]  ;;  %v82_v57 = vld [vmem:[%s482_s3 + $0x40] sm:$0xff] }
  0x16   :  { %128 = vmatpush.msra.mxu1 %v61_v17  ;;  %v316_v58 = vld [vmem:[#allocation2 + $0x120] ss:$0 sm:$0xff]  ;;  %v81_v59 = vld [vmem:[%s482_s3 + $0x38] sm:$0xff]  ;;  %v80_v61 = vld [vmem:[%s482_s3 + $0x30] sm:$0xff] }
  0x17   :  { %102 = vmatpush.msra.mxu0 %v44_v14  ;;  %206 = vmatpush.msra.mxu2 %v87_v51  ;;  %v79_v0 = vld [vmem:[%s482_s3 + $0x28] sm:$0xff]  ;;  %v78_v2 = vld [vmem:[%s482_s3 + $0x20] sm:$0xff]  ;;  %v77_v4 = vld [vmem:[%s482_s3 + $0x18] sm:$0xff] }
  0x18   :  { %129 = vmatpush.msra.mxu1 %v60_v19  ;;  %v76_v5 = vld [vmem:[%s482_s3 + $0x10] sm:$0xff]  ;;  %v75_v6 = vld [vmem:[%s482_s3 + $0x8] sm:$0xff]  ;;  %v74_v7 = vld [vmem:[%s482_s3] sm:$0xff] }
  0x19   :  { %103 = vmatpush.msra.mxu0 %v43_v16  ;;  %207 = vmatpush.msra.mxu2 %v86_v52  ;;  %v93_v8 = vld [vmem:[%s482_s3 + $0x98] sm:$0x1]  ;;  %v91_v11 = vld [vmem:[%s482_s3 + $0x88] sm:$0xff]  ;;  %v90_v12 = vld [vmem:[%s482_s3 + $0x80] sm:$0xff] }
  0x1a   :  { %130 = vmatpush.msra.mxu1 %v59_v21  ;;  %309 = vpush %v93_v8  ;;  %v317_v21 = vld [vmem:[%s482_s3 + $0x90] ss:$0 sm:$0xff] }
  0x1b   :  { %104 = vmatpush.msra.mxu0 %v42_v18  ;;  %208 = vmatpush.msra.mxu2 %v85_v53 }
  0x1c   :  { %131 = vmatpush.msra.mxu1 %v58_v23 }
  0x1d   :  { %105 = vmatpush.msra.mxu0 %v41_v20  ;;  %209 = vmatpush.msra.mxu2 %v84_v55 }
  0x1e   :  { %132 = vmatpush.msra.mxu1 %v57_v28 }
  0x1f   :  { %106 = vmatpush.msra.mxu0 %v40_v22  ;;  %210 = vmatpush.msra.mxu2 %v83_v56 }
  0x20   :  { %133 = vmatpush.msra.mxu1 %v56_v29 }
  0x21   :  { %107 = vmatpush.msra.mxu0 %v39_v24  ;;  %211 = vmatpush.msra.mxu2 %v82_v57 }
  0x22   :  { %134 = vmatpush.msra.mxu1 %v55_v30 }
  0x23   :  { %108 = vmatpush.msra.mxu0 %v38_v25  ;;  %212 = vmatpush.msra.mxu2 %v81_v59 }
  0x24   :  { %135 = vmatpush.msra.mxu1 %v54_v31 }
  0x25   :  { %109 = vmatpush.msra.mxu0 %v37_v26  ;;  %213 = vmatpush.msra.mxu2 %v80_v61 }
  0x26   :  { %110 = vmatmul.f32.vlgmr.msra.gmra.mxu0 %v36_v27  ;;  %136 = vmatpush.msra.mxu1 %v53_v32 }
  0x27   :  { %214 = vmatpush.msra.mxu2 %v79_v0 }
  0x29   :  { %215 = vmatpush.msra.mxu2 %v78_v2 }
  0x2b   :  { %216 = vmatpush.msra.mxu2 %v77_v4 }
  0x2d   :  { %217 = vmatpush.msra.mxu2 %v76_v5 }
  0x2f   :  { %218 = vmatpush.msra.mxu2 %v75_v6 }
  0x31   :  { %219 = vmatpush.msra.mxu2 %v74_v7 }
  0x4b   :  { %s310_s8 = spop %309 }
  0x4c   :  { %v202_v13 = vstv %s310_s8 }
  0xa3   :  { %v111_v34 = vpop.f32.mrf.mxu0 }
  0xa4   :  { %v114_v35 = vperm.slane %v111_v34, 0 }
  0xa6   :  { %v115_v37 = vmul.f32 %v114_v35, %v71_v33  ;;  %v116_v40 = vmul.f32 %v114_v35, %v72_v38 }
  0xa8   :  { %v117_v39 = vadd.f32 %v115_v37, %v69_v36  ;;  %v118_v43 = vadd.f32 %v116_v40, %v70_v42 }
  0xaa   :  { %v119_v41 = vmax.f32 %v117_v39, 0.0  ;;  %v120_v44 = vmax.f32 %v118_v43, 0.0 }
  0xac   :  { %137 = vmatmul.f32.vlgmr.msra.gmra.mxu1 %v119_v41 }
  0xb4   :  { %140 = vmatmul.f32.gmra.mxu1 %v120_v44 }
 0x129   :  { %v138_v45 = vpop.f32.mrf.mxu1 }
 0x131   :  { %v141_v46 = vpop.f32.mrf.mxu1 }
 0x132   :  { %166 = vmatpush.msra.mxu3 %v141_v46 }
 0x134   :  { %167 = vmatpush.msra.mxu3 %v138_v45 }
 0x135   :  { %304 = vmatmul.msk.f32.vlgmr.msra.gmra.mxu3 %vm145_vm0, %v34_v47 }
 0x13d   :  { %305 = vmatmul.msk.f32.gmra.mxu3 %vm145_vm0, %v35_v48 }
 0x1b8   :  { %v169_v54 = vpop.f32.mrf.mxu3 }
 0x1b9   :  { %v170_v62 = vadd.f32 %v316_v58, %v169_v54 }
 0x1bb   :  { %v175_v3 = vmax.f32 %v170_v62, 0.0 }
 0x1c0   :  { %v172_v60 = vpop.f32.mrf.mxu3 }
 0x1c1   :  { %v173_v63 = vadd.f32 %v316_v58, %v172_v60 }
 0x1c3   :  { %v176_v1 = vmax.f32 %v173_v63, 0.0 }
 0x1c5   :  { %191 = vmatpush.msrb.mxu3 %v176_v1 }
 0x1c7   :  { %192 = vmatpush.msrb.mxu3 %v175_v3 }
 0x1c8   :  { %306 = vmatmul.msk.f32.vlgmr.msrb.gmra.mxu3 %vm145_vm0, %v34_v47 }
 0x1c9   :  { %279 = vmatpush.msra.mxu3 %v91_v11 }
 0x1cb   :  { %280 = vmatpush.msra.mxu3 %v90_v12 }
 0x1d0   :  { %307 = vmatmul.msk.f32.gmra.mxu3 %vm145_vm0, %v35_v48 }
 0x24b   :  { %v194_v9 = vpop.f32.mrf.mxu3 }
 0x24c   :  { %220 = vmatmul.f32.vlgmr.msra.gmra.mxu2 %v194_v9 }
 0x253   :  { %v197_v10 = vpop.f32.mrf.mxu3 }
 0x254   :  { %223 = vmatmul.f32.gmra.mxu2 %v197_v10 }
 0x2cf   :  { %v221_v14 = vpop.f32.mrf.mxu2 }
 0x2d0   :  { %v222_v15 = vadd.f32 %v221_v14, %v202_v13 }
 0x2d2   :  { %v227_v16 = vmax.f32 %v222_v15, 0.0 }
 0x2d4   :  { %230 = vxpose.xlu0.b32.start [1/2] (short) (narrow) %v227_v16, 8 }
 0x2d7   :  { %v224_v17 = vpop.f32.mrf.mxu2 }
 0x2d8   :  { %v225_v18 = vadd.f32 %v224_v17, %v202_v13 }
 0x2da   :  { %v228_v19 = vmax.f32 %v225_v18, 0.0 }
 0x2dc   :  { %231 = vxpose.xlu0.b32.end [2/2] (short) (narrow) %v228_v19, 8 }
 0x378   :  { %v246_v20 = vpop.trf.xlu0 }
 0x379   :  { %308 = vmatmul.msk.f32.vlgmr.msra.gmra.mxu3 %vm145_vm0, %v246_v20 }
 0x3fc   :  { %v282_v22 = vpop.f32.mrf.mxu3 }
 0x3fd   :  { %v283_v23 = vadd.f32 %v317_v21, %v282_v22 }
 0x3ff   :  { %286 = vst.msk [vmem:[#allocation5] sm:$0x3] %vm285_vm1, %v283_v23 }
 0x400   :  { %297 = dma.vmem_to_hbm [thread:$0]  %s293_s12, 32, %s295_s15, [#allocation4]  }
 0x401   :  { %368 = dma.done.wait [#allocation4], 32  }
 0x402   :  { %369 = vsyncadd [#allocation4], 4294967264 }
 0x403   :  { %302 = vsyncpa [#allocation3], 1 }
 0x404   :  { %303 = vsyncpa [#allocation4], 1 }

</bundles_post_ra>
